<compile_context>
chip_gen: v7x
topology: tpu7x:2x2x1
jax: 0.10.0
libtpu: 0.0.40
codegen_flags: <defaults>
</compile_context>

<pallas_src>
import functools

import jax
import jax.numpy as jnp
from jax.experimental import pallas as pl
from jax.experimental.pallas import tpu as pltpu

_NEG_BIG = -1.0e30  # bias padding: padded lanes vanish from the softmax


def _gumbel_softmax_kernel(x_ref, w_ref, b_ref, logits_ref, prob_ref):
    """One batch tile.

    x_ref:      [TB, F]   input rows
    w_ref:      [F, YP]   Linear weight, transposed + lane-padded to YP (mult. of 128)
    b_ref:      [1, YP]   bias, pad lanes = -1e30
    logits_ref: [TB, YP]  lane-dense outputs (pad lanes sliced off by the wrapper)
    prob_ref:   [TB, YP]
    """
    x = x_ref[...]
    w = w_ref[...]
    b = b_ref[...]

    # Linear(f_dim -> y_dim): x @ W^T + b  (W already transposed/padded to [F, YP]).
    logits = jnp.dot(x, w, preferred_element_type=jnp.float32) + b
    logits_ref[...] = logits.astype(logits_ref.dtype)

    # Numerically stable softmax along the lane axis. Padded lanes carry a
    # -1e30 bias, so exp() underflows to exactly 0 and they do not perturb
    # the max or the sum.
    m = jnp.max(logits, axis=-1, keepdims=True)
    e = jnp.exp(logits - m)
    denom = jnp.sum(e, axis=-1, keepdims=True)
    # approx=True lowers to the EUP vrcp slot (otherwise idle here).
    prob = e * pl.reciprocal(denom, approx=True)
    prob_ref[...] = prob.astype(prob_ref.dtype)


def _pick_block_b(batch, target=512):
    """Largest row tile that divides `batch`, is a multiple of 8 (or the full
    batch), and is at most `target` rows (keeps double-buffered tiles small
    enough for v7x's 64 MiB VMEM while amortizing per-step overhead)."""
    if batch <= target:
        return batch
    cand = (min(target, batch) // 8) * 8
    while cand >= 8:
        if batch % cand == 0:
            return cand
        cand -= 8
    return batch  # fallback: single full-batch tile (block == full dim is legal)


@functools.partial(jax.jit, static_argnames=("block_b",))
def gumbel_softmax_forward(x, w, b, *, block_b=None):
    """Forward pass of GumbelSoftmax for 2-D input.

    x: [B, F] float32
    w: [Y, F] float32  (PyTorch nn.Linear weight layout)
    b: [Y]    float32
    Returns (logits [B, Y], prob [B, Y], y [B, Y]).
    """
    B, F = x.shape
    Y = w.shape[0]

    # Lane-dense output padding.
    YP = max(128, ((Y + 127) // 128) * 128)
    w_t = jnp.zeros((F, YP), x.dtype).at[:, :Y].set(w.T)
    b_p = jnp.full((1, YP), _NEG_BIG, x.dtype).at[0, :Y].set(b)

    if block_b is None:
        block_b = _pick_block_b(B)
    grid = (B // block_b,)

    out_shapes = (
        jax.ShapeDtypeStruct((B, YP), jnp.float32),  # padded logits
        jax.ShapeDtypeStruct((B, YP), jnp.float32),  # padded prob
    )

    logits_p, prob_p = pl.pallas_call(
        _gumbel_softmax_kernel,
        out_shape=out_shapes,
        grid_spec=pltpu.PrefetchScalarGridSpec(
            num_scalar_prefetch=0,
            grid=grid,
            in_specs=[
                pl.BlockSpec((block_b, F), lambda i: (i, 0)),
                pl.BlockSpec((F, YP), lambda i: (0, 0)),
                pl.BlockSpec((1, YP), lambda i: (0, 0)),
            ],
            out_specs=[
                pl.BlockSpec((block_b, YP), lambda i: (i, 0)),
                pl.BlockSpec((block_b, YP), lambda i: (i, 0)),
            ],
        ),
        compiler_params=pltpu.CompilerParams(
            dimension_semantics=("parallel",),
        ),
    )(x, w_t, b_p)

    logits = logits_p[:, :Y]
    prob = prob_p[:, :Y]
    # torch.empty_like(prob) is uninitialized memory; return deterministic
    # zeros from the wrapper instead of burning kernel writeback on it.
    y = jnp.zeros((B, Y), prob.dtype)
    return logits, prob, y


if __name__ == "__main__":
    # Shapes implied by the module's 2-D path: x [batch, f_dim] -> outputs [batch, y_dim]
    B, F_DIM, Y_DIM = 8, 32, 16

    key = jax.random.PRNGKey(0)
    k_x, k_w, k_b = jax.random.split(key, 3)

    x = jax.random.normal(k_x, (B, F_DIM), dtype=jnp.float32)

    # Deterministic Linear(f_dim, y_dim) params (PyTorch stores weight as [Y, F]).
    bound = 1.0 / jnp.sqrt(jnp.float32(F_DIM))
    w = jax.random.uniform(k_w, (Y_DIM, F_DIM), minval=-bound, maxval=bound,
                           dtype=jnp.float32)
    b = jax.random.uniform(k_b, (Y_DIM,), minval=-bound, maxval=bound,
                           dtype=jnp.float32)
    # TODO(synk): the before_logits Linear + ELU path in forward() is dead code
    # (its result is immediately overwritten), so it is intentionally not computed.

    logits, prob, y = gumbel_softmax_forward(x, w, b)
    jax.block_until_ready((logits, prob, y))

    # Reference check in plain JAX.
    ref_logits = x @ w.T + b[None, :]
    ref_prob = jax.nn.softmax(ref_logits, axis=-1)

    assert logits.shape == (B, Y_DIM) and prob.shape == (B, Y_DIM) and y.shape == (B, Y_DIM)
    assert jnp.allclose(logits, ref_logits, atol=1e-4, rtol=1e-4), "logits mismatch"
    # prob uses an approximate (EUP) reciprocal -> loosen tolerance slightly.
    assert jnp.allclose(prob, ref_prob, atol=1e-2, rtol=1e-2), "prob mismatch"
    assert jnp.allclose(jnp.sum(prob, axis=-1), 1.0, atol=1e-2), "prob rows not normalized"

    print("KERNEL_OK")
</pallas_src>

<mosaic_0001>
module attributes {stable_mosaic.version = 11 : i64} {
  func.func @_gumbel_softmax_kernel(%arg0: i32, %arg1: memref<8x32xf32, #tpu.memory_space<vmem>>, %arg2: memref<32x128xf32, #tpu.memory_space<vmem>>, %arg3: memref<1x128xf32, #tpu.memory_space<vmem>>, %arg4: memref<8x128xf32, #tpu.memory_space<vmem>>, %arg5: memref<8x128xf32, #tpu.memory_space<vmem>>) attributes {dimension_semantics = [#tpu.dimension_semantics<parallel>], iteration_bounds = array<i64: 1>, scalar_prefetch = 0 : i64, scratch_operands = 0 : i64, tpu.core_type = #tpu.core_type<tc>, window_params = [{transform_indices = @transform_0, window_bounds = array<i64: 8, 32>}, {pipeline_mode = #tpu.pipeline_mode<synchronous>, transform_indices = @transform_1, window_bounds = array<i64: 32, 128>}, {pipeline_mode = #tpu.pipeline_mode<synchronous>, transform_indices = @transform_2, window_bounds = array<i64: 1, 128>}, {transform_indices = @transform_3, window_bounds = array<i64: 8, 128>}, {transform_indices = @transform_4, window_bounds = array<i64: 8, 128>}]} {
    %c0 = arith.constant 0 : index
    %c0_0 = arith.constant 0 : index
    %0 = vector.load %arg1[%c0, %c0_0] : memref<8x32xf32, #tpu.memory_space<vmem>>, vector<8x32xf32>
    %c0_1 = arith.constant 0 : index
    %c0_2 = arith.constant 0 : index
    %1 = vector.load %arg2[%c0_1, %c0_2] : memref<32x128xf32, #tpu.memory_space<vmem>>, vector<32x128xf32>
    %c0_3 = arith.constant 0 : index
    %c0_4 = arith.constant 0 : index
    %2 = vector.load %arg3[%c0_3, %c0_4] : memref<1x128xf32, #tpu.memory_space<vmem>>, vector<1x128xf32>
    %cst = arith.constant dense<0.000000e+00> : vector<8x128xf32>
    %3 = tpu.matmul %0, %1, %cst {dimension_numbers = #tpu.dot_dimension_numbers<[1], [0], [0], [1], [0, 0, 1, 1], [], []>} : vector<8x32xf32>, vector<32x128xf32>, vector<8x128xf32> -> vector<8x128xf32>
    %4 = vector.broadcast %2 : vector<1x128xf32> to vector<8x128xf32>
    %5 = arith.addf %3, %4 : vector<8x128xf32>
    %c0_5 = arith.constant 0 : index
    %c0_6 = arith.constant 0 : index
    %6 = vector.load %arg4[%c0_5, %c0_6] : memref<8x128xf32, #tpu.memory_space<vmem>>, vector<8x128xf32>
    tpu.vector_store %arg4[%c0_5, %c0_6], %5 {strides = array<i32>} : memref<8x128xf32, #tpu.memory_space<vmem>>, vector<8x128xf32>,
    %cst_7 = arith.constant dense<0xFF800000> : vector<8xf32>
    %7 = vector.multi_reduction <maximumf>, %5, %cst_7 [1] : vector<8x128xf32> to vector<8xf32>
    %8 = vector.shape_cast %7 : vector<8xf32> to vector<8x1xf32>
    %9 = vector.broadcast %8 : vector<8x1xf32> to vector<8x128xf32>
    %10 = arith.subf %5, %9 : vector<8x128xf32>
    %11 = math.exp %10 : vector<8x128xf32>
    %cst_8 = arith.constant dense<0.000000e+00> : vector<8xf32>
    %12 = vector.multi_reduction <add>, %11, %cst_8 [1] : vector<8x128xf32> to vector<8xf32>
    %13 = vector.shape_cast %12 : vector<8xf32> to vector<8x1xf32>
    %14 = tpu.reciprocal %13 {approx = true} : vector<8x1xf32> -> vector<8x1xf32>
    %15 = vector.broadcast %14 : vector<8x1xf32> to vector<8x128xf32>
    %16 = arith.mulf %11, %15 : vector<8x128xf32>
    %c0_9 = arith.constant 0 : index
    %c0_10 = arith.constant 0 : index
    %17 = vector.load %arg5[%c0_9, %c0_10] : memref<8x128xf32, #tpu.memory_space<vmem>>, vector<8x128xf32>
    tpu.vector_store %arg5[%c0_9, %c0_10], %16 {strides = array<i32>} : memref<8x128xf32, #tpu.memory_space<vmem>>, vector<8x128xf32>,
    return
  }
  func.func @transform_0(%arg0: i32) -> (i32, i32) {
    %c0_i32 = arith.constant 0 : i32
    %c0_i32_0 = arith.constant 0 : i32
    return %arg0, %c0_i32 : i32, i32
  }
  func.func @transform_1(%arg0: i32) -> (i32, i32) {
    %c0_i32 = arith.constant 0 : i32
    %c0_i32_0 = arith.constant 0 : i32
    %c0_i32_1 = arith.constant 0 : i32
    return %c0_i32, %c0_i32_0 : i32, i32
  }
  func.func @transform_2(%arg0: i32) -> (i32, i32) {
    %c0_i32 = arith.constant 0 : i32
    %c0_i32_0 = arith.constant 0 : i32
    %c0_i32_1 = arith.constant 0 : i32
    return %c0_i32, %c0_i32_0 : i32, i32
  }
  func.func @transform_3(%arg0: i32) -> (i32, i32) {
    %c0_i32 = arith.constant 0 : i32
    %c0_i32_0 = arith.constant 0 : i32
    return %arg0, %c0_i32 : i32, i32
  }
  func.func @transform_4(%arg0: i32) -> (i32, i32) {
    %c0_i32 = arith.constant 0 : i32
    %c0_i32_0 = arith.constant 0 : i32
    return %arg0, %c0_i32 : i32, i32
  }
}

</mosaic_0001>

<bundles_post_ra>
// kernel: gumbel_softmax_forward.1
= control target key start
LH: loop header
LB: loop body
LE: loop exit
PB: predicated region body
PF: predicated region fallthrough
CT: control target
= control target key end

     0   :  { %10 = vsyncpa [#allocation3], 0  ;;  %v224_v3 = vmov 0.0|0.0   ;;  %vm225_vm0 = vmmov 0   ;;  %v226_v6 = vmov 0.0   ;;  %s296_s0 = inlined_call_operand.vmem [shape: f32[8,32], index: 0, kind: input, shape index: {}]   ;;  %s297_s1 = inlined_call_operand.vmem [shape: f32[32,128], index: 1, kind: input, shape index: {}]   ;;  %s298_s2 = inlined_call_operand.vmem [shape: f32[1,128], index: 2, kind: input, shape index: {}]   ;;  %s299_s3 = inlined_call_operand.hbm [shape: f32[8,128], index: 3, kind: output, shape index: {0}]   ;;  %s300_s4 = inlined_call_operand.hbm [shape: f32[8,128], index: 4, kind: output, shape index: {1}]  }
   0x1   :  { %v19_v0 = vld [vmem:[%s297_s1] sm:$0xff]  ;;  %v20_v1 = vld [vmem:[%s297_s1 + $0x8] sm:$0xff]  ;;  %v21_v2 = vld [vmem:[%s297_s1 + $0x10] sm:$0xff]  ;;  %161 = vmatprep.subr.bf16.mxu0 %v224_v3  ;;  %158 = vmatprep.mubr.msk.f32.mxu0 %vm225_vm0, %v226_v6 }
   0x2   :  { %v162_v4 = vpack.c.bf16 %v20_v1, %v19_v0  ;;  %v22_v5 = vld [vmem:[%s297_s1 + $0x18] sm:$0xff] }
   0x3   :  { %11 = vsyncpa [#allocation5], 0  ;;  %v165_v7 = vpack.c.bf16 %v22_v5, %v21_v2  ;;  %v18_v8 = vld [vmem:[%s296_s0] sm:$0xff]  ;;  %vm30_vm1 = vcmask 261120   ;;  %s227_s1 = smov [#allocation2]  }
   0x4   :  { %163 = vmatpush3.bf16.msra.mxu0 %v162_v4  ;;  %v143_v9 = vld [vmem:[%s298_s2] ss:$0 sm:$0xff]  ;;  %s121_s27 = sshll.u32 %s227_s1, 4  ;;  %s122_s27 = int_to_ptr.vmem [resolvable:$true] %s121_s27 }
   0x5   :  { %164 = vmatprep.subr.bf16.mxu0 %v224_v3  ;;  %s176_s0 = scalar_lea.vmem %s122_s27, 128  ;;  %p181_p1 = scmp.lt.s32.totalorder %s122_s27, %s122_s27 }
   0x6   :  { %p177_p0 = scmp.ne.s32.totalorder %s122_s27, %s176_s0  ;;  %p182_p2 = scmp.lt.s32.totalorder %s176_s0, %s176_s0 }
   0x8   :  { %166 = vmatpush3.bf16.msra.mxu0 %v165_v7  ;;  %p183_p3 = por %p182_p2, %p181_p1 }
   0xa   :  { %p184_p4 = pnand %p183_p3, %p177_p0 }
   0xb   :  { %159 = vmatmul.mubr.msk.f32.vlgmr.msra.gmra.mrb[0].mxu0 %vm30_vm1, %v18_v8 }
  0xde   :  { %v100_v10 = vpop.f32.mrb[0].mxu0 }
  0xdf   :  { %v101_v11 = vadd.f32 %v143_v9, %v100_v10  ;;  %v160_v12 = vpop.f32.mrb[1].mxu0 }
  0xe1   :  { %104 = vst [vmem:[#allocation2] sm:$0xff] %v101_v11  ;;  %105 = vmax.xlane.f32.xlu0 %v101_v11 }
 0x16e   :  { %v106_v13 = vpop.xlane.xlu0 %105 }
 0x16f   :  { %v107_v14 = vsub.f32 %v101_v11, %v106_v13 }
 0x171   :  { %v108_v15 = vmul.f32 1.442695, %v107_v14 }
 0x173   :  { %172 = vpow2.f32 %v108_v15 }
 0x17d   :  { %v173_v16 = vpop.eup %172 }
 0x17e   :  { %110 = vadd.xlane.f32.xlu0 %v173_v16 }
 0x17f   :  { %187 = shalt.err (!%p184_p4)
}
 0x180   :  { %s188_s29 = scalar_lea.hbm %s299_s3, 128 }
 0x181   :  { %p189_p5 = scmp.ne.s32.totalorder %s299_s3, %s188_s29  ;;  %p192_p6 = scmp.lt.u32.totalorder %s188_s29, %s299_s3 }
 0x183   :  { %p194_p7 = pnand %p192_p6, %p189_p5 }
 0x185   :  { %197 = shalt.err (!%p194_p7)
}
 0x186   :  { %124 = dma.vmem_to_hbm [thread:$0]  %s122_s27, 128, %s299_s3, [#allocation3]  }
 0x187   :  { %s228_s10 = smov [#allocation4]  }
 0x188   :  { %s131_s11 = sshll.u32 %s228_s10, 4  ;;  %s132_s11 = int_to_ptr.vmem [resolvable:$true] %s131_s11 }
 0x189   :  { %s198_s12 = scalar_lea.vmem %s132_s11, 128  ;;  %p203_p9 = scmp.lt.s32.totalorder %s132_s11, %s132_s11 }
 0x18a   :  { %p199_p8 = scmp.ne.s32.totalorder %s132_s11, %s198_s12  ;;  %p204_p10 = scmp.lt.s32.totalorder %s198_s12, %s198_s12 }
 0x18c   :  { %p205_p11 = por %p204_p10, %p203_p9 }
 0x18e   :  { %p206_p12 = pnand %p205_p11, %p199_p8 }
 0x20b   :  { %v111_v17 = vpop.xlane.xlu0 %110 }
 0x20c   :  { %174 = vrcp.f32 %v111_v17 }
 0x216   :  { %v175_v18 = vpop.eup %174 }
 0x217   :  { %v113_v19 = vmul.f32 %v175_v18, %v173_v16 }
 0x219   :  { %114 = vst [vmem:[#allocation4] sm:$0xff] %v113_v19 }
 0x21a   :  { %209 = shalt.err (!%p206_p12)
}
 0x21b   :  { %s210_s15 = scalar_lea.hbm %s300_s4, 128 }
 0x21c   :  { %p211_p13 = scmp.ne.s32.totalorder %s300_s4, %s210_s15  ;;  %p214_p0 = scmp.lt.u32.totalorder %s210_s15, %s300_s4 }
 0x21e   :  { %p216_p1 = pnand %p214_p0, %p211_p13 }
 0x220   :  { %219 = shalt.err (!%p216_p1)
}
 0x221   :  { %134 = dma.vmem_to_hbm [thread:$0]  %s132_s11, 128, %s300_s4, [#allocation5]  }
 0x222   :  { %220 = dma.done.wait [#allocation3], 128  }
 0x223   :  { %221 = vsyncadd [#allocation3], 4294967168 }
 0x224   :  { %222 = dma.done.wait [#allocation5], 128  }
 0x225   :  { %223 = vsyncadd [#allocation5], 4294967168 }
 0x226   :  { %141 = vsyncpa [#allocation3], 1 }
 0x227   :  { %142 = vsyncpa [#allocation5], 1 }

</bundles_post_ra>
